<compile_context>
chip_gen: v6e
topology: v6e:2x2x1
jax: 0.10.0
libtpu: 0.0.40
codegen_flags: <defaults>
</compile_context>

<pallas_src>
import functools

import jax
import jax.numpy as jnp
import numpy as np
from jax.experimental import pallas as pl
from jax.experimental.pallas import tpu as pltpu


def _channel_attention_kernel(x_ref, w1_ref, w2_ref, o_ref, sum_acc, max_acc,
                              *, nb, inv_hw):
    # x_ref : (nb, C, hw_tile)  NCHW-layout tile (C on sublanes, spatial on lanes)
    # w1_ref: (C, me_c)         fc1 weight, pre-transposed
    # w2_ref: (me_c, C)         fc2 weight, pre-transposed
    # o_ref : (nb, C)           sigmoid(fc2(relu(fc1(avg))) + fc2(relu(fc1(max))))
    # sum_acc / max_acc: (nb, C) f32 running pooling accumulators (VMEM scratch)
    j = pl.program_id(1)

    @pl.when(j == 0)
    def _():
        sum_acc[...] = jnp.zeros_like(sum_acc)
        max_acc[...] = jnp.full_like(max_acc, -jnp.inf)

    x = x_ref[...]                                            # native dtype
    # Spatial (lane-axis) pooling: f32-accumulated sum, native-dtype max.
    sum_acc[...] += jnp.sum(x, axis=-1, dtype=jnp.float32)    # (nb, C)
    max_acc[...] = jnp.maximum(max_acc[...],
                               jnp.max(x, axis=-1).astype(jnp.float32))

    @pl.when(j == pl.num_programs(1) - 1)
    def _():
        avg = sum_acc[...] * inv_hw                           # (nb, C) f32
        mx = max_acc[...]                                     # (nb, C) f32
        pooled = jnp.concatenate([avg, mx], axis=0)           # (2*nb, C)

        w1 = w1_ref[...].astype(jnp.float32)                  # (C, me_c)
        w2 = w2_ref[...].astype(jnp.float32)                  # (me_c, C)

        # One fc1 + relu + fc2 pass for both pooling branches.
        h = jnp.maximum(
            jnp.dot(pooled, w1, preferred_element_type=jnp.float32), 0.0)
        y = jnp.dot(h, w2, preferred_element_type=jnp.float32)   # (2*nb, C)

        out = y[:nb] + y[nb:]                                 # avg-branch + max-branch
        o_ref[...] = jax.nn.sigmoid(out).astype(o_ref.dtype)


def _pick_nb(n):
    # Batch elements per grid step: a full sublane group when possible,
    # otherwise the full (small) batch so the output block equals the array dim.
    return 8 if n % 8 == 0 else n


def _pick_hw_tile(hw, nb, c, itemsize, target_bytes=4 * 1024 * 1024):
    # HW tile must be a multiple of 128 (lane width) or the full extent.
    if hw % 128 != 0:
        return hw
    budget_elems = max(128, target_bytes // max(1, nb * c * itemsize))
    best = 128
    t = 128
    while t <= hw:
        if hw % t == 0 and t <= budget_elems:
            best = t
        t += 128
    return best


def channel_attention(x_nchw, w1, w2):
    """x_nchw: (N, C, H, W); w1: (me_c, C, 1, 1); w2: (C, me_c, 1, 1).

    Returns (N, C, 1, 1) attention weights, matching the PyTorch module.
    """
    N, C, H, W = x_nchw.shape
    me_c = w1.shape[0]
    HW = H * W

    nb = _pick_nb(N)
    hw_tile = _pick_hw_tile(HW, nb, C, np.dtype(x_nchw.dtype).itemsize)

    # Free reshape (no transpose): channels stay on sublanes, spatial on lanes.
    x_nchw_flat = x_nchw.reshape(N, C, HW)
    # 1x1-conv weights, pre-transposed (tiny).
    w1_t = jnp.transpose(w1[:, :, 0, 0], (1, 0))              # (C, me_c)
    w2_t = jnp.transpose(w2[:, :, 0, 0], (1, 0))              # (me_c, C)

    grid = (N // nb, HW // hw_tile)
    kernel = functools.partial(_channel_attention_kernel,
                               nb=nb, inv_hw=1.0 / float(HW))

    out = pl.pallas_call(
        kernel,
        out_shape=jax.ShapeDtypeStruct((N, C), x_nchw.dtype),
        grid=grid,
        in_specs=[
            pl.BlockSpec((nb, C, hw_tile), lambda i, j: (i, 0, j)),
            pl.BlockSpec((C, me_c), lambda i, j: (0, 0)),
            pl.BlockSpec((me_c, C), lambda i, j: (0, 0)),
        ],
        out_specs=pl.BlockSpec((nb, C), lambda i, j: (i, 0)),
        scratch_shapes=[
            pltpu.VMEM((nb, C), jnp.float32),   # running sum
            pltpu.VMEM((nb, C), jnp.float32),   # running max
        ],
        compiler_params=pltpu.CompilerParams(
            dimension_semantics=("parallel", "arbitrary")),
    )(x_nchw_flat, w1_t, w2_t)

    return out.reshape(N, C, 1, 1)


def _reference(x, w1, w2):
    # Pure-JAX reference mirroring the PyTorch forward.
    avg = jnp.mean(x, axis=(2, 3))                 # (N, C)
    mx = jnp.max(x, axis=(2, 3))                   # (N, C)
    w1m = w1[:, :, 0, 0]                           # (me_c, C)
    w2m = w2[:, :, 0, 0]                           # (C, me_c)

    def mlp(v):
        h = jnp.maximum(v @ w1m.T, 0.0)
        return h @ w2m.T

    out = jax.nn.sigmoid(mlp(avg) + mlp(mx))
    return out.reshape(x.shape[0], x.shape[1], 1, 1)


if __name__ == "__main__":
    # Small shapes consistent with the module (channels >= reduction);
    # H=W=16 -> HW=256 exercises the tiled-HW accumulator path (2 steps of 128).
    N, C, H, W = 2, 64, 16, 16
    reduction = 16
    me_c = C // reduction                                  # 4

    key = jax.random.PRNGKey(0)
    kx, k1, k2 = jax.random.split(key, 3)
    x = jax.random.normal(kx, (N, C, H, W), dtype=jnp.float32)
    # Conv2d 1x1 (no bias) weights: shapes (out, in, 1, 1).
    w1 = jax.random.normal(k1, (me_c, C, 1, 1), dtype=jnp.float32) * (1.0 / np.sqrt(C))
    w2 = jax.random.normal(k2, (C, me_c, 1, 1), dtype=jnp.float32) * (1.0 / np.sqrt(me_c))

    out = jax.block_until_ready(channel_attention(x, w1, w2))
    ref = jax.block_until_ready(_reference(x, w1, w2))

    assert out.shape == (N, C, 1, 1)
    np.testing.assert_allclose(np.asarray(out), np.asarray(ref), rtol=1e-5, atol=1e-5)
    print("KERNEL_OK")
</pallas_src>

<mosaic_0001>
module attributes {stable_mosaic.version = 11 : i64} {
  func.func @_channel_attention_kernel(%arg0: i32, %arg1: i32, %arg2: memref<2x64x256xf32, #tpu.memory_space<vmem>>, %arg3: memref<64x4xf32, #tpu.memory_space<vmem>>, %arg4: memref<4x64xf32, #tpu.memory_space<vmem>>, %arg5: memref<2x64xf32, #tpu.memory_space<vmem>>, %arg6: memref<2x64xf32, #tpu.memory_space<vmem>>, %arg7: memref<2x64xf32, #tpu.memory_space<vmem>>) attributes {dimension_semantics = [#tpu.dimension_semantics<parallel>, #tpu.dimension_semantics<arbitrary>], iteration_bounds = array<i64: 1, 1>, scalar_prefetch = 0 : i64, scratch_operands = 2 : i64, tpu.core_type = #tpu.core_type<tc>, window_params = [{transform_indices = @transform_0, window_bounds = array<i64: 2, 64, 256>}, {pipeline_mode = #tpu.pipeline_mode<synchronous>, transform_indices = @transform_1, window_bounds = array<i64: 64, 4>}, {pipeline_mode = #tpu.pipeline_mode<synchronous>, transform_indices = @transform_2, window_bounds = array<i64: 4, 64>}, {transform_indices = @transform_3, window_bounds = array<i64: 2, 64>}]} {
    %c0_i32 = arith.constant 0 : i32
    %0 = arith.cmpi eq, %arg1, %c0_i32 : i32
    %1 = arith.extui %0 : i1 to i32
    %c0_i32_0 = arith.constant 0 : i32
    %2 = arith.cmpi ne, %1, %c0_i32_0 : i32
    scf.if %2 {
      %cst_14 = arith.constant 0.000000e+00 : f32
      %15 = vector.broadcast %cst_14 : f32 to vector<2x64xf32>
      %c0_15 = arith.constant 0 : index
      %c0_16 = arith.constant 0 : index
      %16 = vector.load %arg6[%c0_15, %c0_16] : memref<2x64xf32, #tpu.memory_space<vmem>>, vector<2x64xf32>
      tpu.vector_store %arg6[%c0_15, %c0_16], %15 {strides = array<i32>} : memref<2x64xf32, #tpu.memory_space<vmem>>, vector<2x64xf32>,
      %cst_17 = arith.constant 0xFF800000 : f32
      %17 = vector.broadcast %cst_17 : f32 to vector<2x64xf32>
      %c0_18 = arith.constant 0 : index
      %c0_19 = arith.constant 0 : index
      %18 = vector.load %arg7[%c0_18, %c0_19] : memref<2x64xf32, #tpu.memory_space<vmem>>, vector<2x64xf32>
      tpu.vector_store %arg7[%c0_18, %c0_19], %17 {strides = array<i32>} : memref<2x64xf32, #tpu.memory_space<vmem>>, vector<2x64xf32>,
    } else {
    }
    %c0 = arith.constant 0 : index
    %c0_1 = arith.constant 0 : index
    %c0_2 = arith.constant 0 : index
    %3 = vector.load %arg2[%c0, %c0_1, %c0_2] : memref<2x64x256xf32, #tpu.memory_space<vmem>>, vector<2x64x256xf32>
    %c0_3 = arith.constant 0 : index
    %c0_4 = arith.constant 0 : index
    %4 = vector.load %arg6[%c0_3, %c0_4] : memref<2x64xf32, #tpu.memory_space<vmem>>, vector<2x64xf32>
    %cst = arith.constant dense<0.000000e+00> : vector<2x64xf32>
    %5 = vector.multi_reduction <add>, %3, %cst [2] : vector<2x64x256xf32> to vector<2x64xf32>
    %6 = arith.addf %4, %5 : vector<2x64xf32>
    %c0_5 = arith.constant 0 : index
    %c0_6 = arith.constant 0 : index
    %7 = vector.load %arg6[%c0_5, %c0_6] : memref<2x64xf32, #tpu.memory_space<vmem>>, vector<2x64xf32>
    tpu.vector_store %arg6[%c0_5, %c0_6], %6 {strides = array<i32>} : memref<2x64xf32, #tpu.memory_space<vmem>>, vector<2x64xf32>,
    %c0_7 = arith.constant 0 : index
    %c0_8 = arith.constant 0 : index
    %8 = vector.load %arg7[%c0_7, %c0_8] : memref<2x64xf32, #tpu.memory_space<vmem>>, vector<2x64xf32>
    %cst_9 = arith.constant dense<0xFF800000> : vector<2x64xf32>
    %9 = vector.multi_reduction <maximumf>, %3, %cst_9 [2] : vector<2x64x256xf32> to vector<2x64xf32>
    %10 = arith.maximumf %8, %9 : vector<2x64xf32>
    %c0_10 = arith.constant 0 : index
    %c0_11 = arith.constant 0 : index
    %11 = vector.load %arg7[%c0_10, %c0_11] : memref<2x64xf32, #tpu.memory_space<vmem>>, vector<2x64xf32>
    tpu.vector_store %arg7[%c0_10, %c0_11], %10 {strides = array<i32>} : memref<2x64xf32, #tpu.memory_space<vmem>>, vector<2x64xf32>,
    %c0_i32_12 = arith.constant 0 : i32
    %12 = arith.cmpi eq, %arg1, %c0_i32_12 : i32
    %13 = arith.extui %12 : i1 to i32
    %c0_i32_13 = arith.constant 0 : i32
    %14 = arith.cmpi ne, %13, %c0_i32_13 : i32
    scf.if %14 {
      %c0_14 = arith.constant 0 : index
      %c0_15 = arith.constant 0 : index
      %15 = vector.load %arg6[%c0_14, %c0_15] : memref<2x64xf32, #tpu.memory_space<vmem>>, vector<2x64xf32>
      %cst_16 = arith.constant 3.906250e-03 : f32
      %16 = vector.broadcast %cst_16 : f32 to vector<2x64xf32>
      %17 = arith.mulf %15, %16 : vector<2x64xf32>
      %c0_17 = arith.constant 0 : index
      %c0_18 = arith.constant 0 : index
      %18 = vector.load %arg7[%c0_17, %c0_18] : memref<2x64xf32, #tpu.memory_space<vmem>>, vector<2x64xf32>
      %19 = tpu.concatenate %17, %18 in 0 : vector<2x64xf32>, vector<2x64xf32> -> vector<4x64xf32>
      %c0_19 = arith.constant 0 : index
      %c0_20 = arith.constant 0 : index
      %20 = vector.load %arg3[%c0_19, %c0_20] : memref<64x4xf32, #tpu.memory_space<vmem>>, vector<64x4xf32>
      %c0_21 = arith.constant 0 : index
      %c0_22 = arith.constant 0 : index
      %21 = vector.load %arg4[%c0_21, %c0_22] : memref<4x64xf32, #tpu.memory_space<vmem>>, vector<4x64xf32>
      %cst_23 = arith.constant dense<0.000000e+00> : vector<4x4xf32>
      %22 = tpu.matmul %19, %20, %cst_23 {dimension_numbers = #tpu.dot_dimension_numbers<[1], [0], [0], [1], [0, 0, 1, 1], [], []>} : vector<4x64xf32>, vector<64x4xf32>, vector<4x4xf32> -> vector<4x4xf32>
      %cst_24 = arith.constant 0.000000e+00 : f32
      %23 = vector.broadcast %cst_24 : f32 to vector<4x4xf32>
      %24 = arith.maximumf %22, %23 : vector<4x4xf32>
      %cst_25 = arith.constant dense<0.000000e+00> : vector<4x64xf32>
      %25 = tpu.matmul %24, %21, %cst_25 {dimension_numbers = #tpu.dot_dimension_numbers<[1], [0], [0], [1], [0, 0, 1, 1], [], []>} : vector<4x4xf32>, vector<4x64xf32>, vector<4x64xf32> -> vector<4x64xf32>
      %26 = vector.extract_strided_slice %25 {offsets = [0, 0], sizes = [2, 64], strides = [1, 1]} : vector<4x64xf32> to vector<2x64xf32>
      %27 = vector.extract_strided_slice %25 {offsets = [2, 0], sizes = [2, 64], strides = [1, 1]} : vector<4x64xf32> to vector<2x64xf32>
      %28 = arith.addf %26, %27 : vector<2x64xf32>
      %29 = arith.negf %28 : vector<2x64xf32>
      %30 = math.exp %29 : vector<2x64xf32>
      %cst_26 = arith.constant 1.000000e+00 : f32
      %31 = vector.broadcast %cst_26 : f32 to vector<2x64xf32>
      %32 = arith.addf %31, %30 : vector<2x64xf32>
      %33 = arith.divf %31, %32 : vector<2x64xf32>
      %c0_27 = arith.constant 0 : index
      %c0_28 = arith.constant 0 : index
      %34 = vector.load %arg5[%c0_27, %c0_28] : memref<2x64xf32, #tpu.memory_space<vmem>>, vector<2x64xf32>
      tpu.vector_store %arg5[%c0_27, %c0_28], %33 {strides = array<i32>} : memref<2x64xf32, #tpu.memory_space<vmem>>, vector<2x64xf32>,
    } else {
    }
    return
  }
  func.func @transform_0(%arg0: i32, %arg1: i32) -> (i32, i32, i32) {
    %c0_i32 = arith.constant 0 : i32
    %c0_i32_0 = arith.constant 0 : i32
    return %arg0, %c0_i32, %arg1 : i32, i32, i32
  }
  func.func @transform_1(%arg0: i32, %arg1: i32) -> (i32, i32) {
    %c0_i32 = arith.constant 0 : i32
    %c0_i32_0 = arith.constant 0 : i32
    %c0_i32_1 = arith.constant 0 : i32
    return %c0_i32, %c0_i32_0 : i32, i32
  }
  func.func @transform_2(%arg0: i32, %arg1: i32) -> (i32, i32) {
    %c0_i32 = arith.constant 0 : i32
    %c0_i32_0 = arith.constant 0 : i32
    %c0_i32_1 = arith.constant 0 : i32
    return %c0_i32, %c0_i32_0 : i32, i32
  }
  func.func @transform_3(%arg0: i32, %arg1: i32) -> (i32, i32) {
    %c0_i32 = arith.constant 0 : i32
    %c0_i32_0 = arith.constant 0 : i32
    return %arg0, %c0_i32 : i32, i32
  }
}

</mosaic_0001>

<bundles_post_ra>
// kernel: tpu_custom_call.1
= control target key start
LH: loop header
LB: loop body
LE: loop exit
PB: predicated region body
PF: predicated region fallthrough
CT: control target
= control target key end

     0   :  { %8 = vsyncpa [#allocation5], 0  ;;  %s870_s0 = inlined_call_operand.hbm [shape: f32[2,64,256], index: 0, kind: input, shape index: {}]   ;;  %s871_s1 = inlined_call_operand.vmem [shape: f32[64,4], index: 1, kind: input, shape index: {}]   ;;  %s872_s2 = inlined_call_operand.vmem [shape: f32[4,64], index: 2, kind: input, shape index: {}]   ;;  %s873_s3 = inlined_call_operand.hbm [shape: f32[2,64], index: 3, kind: output, shape index: {}]  }
   0x1   :  { %9 = vsyncpa [#allocation6], 0  ;;  %s673_s12 = smov [#allocation4]  }
   0x2   :  { %s15_s13 = sshll.u32 %s673_s12, 4  ;;  %s16_s13 = int_to_ptr.vmem [resolvable:$true] %s15_s13 }
   0x3   :  { %s637_s14 = scalar_lea.vmem %s16_s13, 4096  ;;  %p642_p1 = scmp.lt.s32.totalorder %s16_s13, %s16_s13 }
   0x4   :  { %p638_p0 = scmp.ne.s32.totalorder %s16_s13, %s637_s14  ;;  %p643_p2 = scmp.lt.s32.totalorder %s637_s14, %s637_s14 }
   0x6   :  { %p644_p3 = por %p643_p2, %p642_p1 }
   0x8   :  { %p645_p4 = pnand %p644_p3, %p638_p0 }
   0xa   :  { %648 = shalt.err (!%p645_p4)
}
   0xb   :  { %s674_s15 = smov 256   ;;  %s675_s16 = smov 16  }
   0xc   :  { %21 = dma.hbm_to_vmem [thread:$0]  %s870_s0, 4096, %s16_s13, [#allocation5], %s674_s15, %s674_s15, %s675_s16  }
   0xd   :  { %669 = dma.done.wait [#allocation5], 4096  }
   0xe   :  { %670 = vsyncadd [#allocation5], 4294963200  ;;  %v52_v0 = vld [vmem:[#allocation4 + $0x80] sm:$0xff]  ;;  %v53_v1 = vld [vmem:[#allocation4 + $0x88] sm:$0xff]  ;;  %vm33_vm0 = vcmask 517120   ;;  %vm678_vm1 = vmmov 0  }
   0xf   :  { %v36_v2 = vld [vmem:[#allocation4] sm:$0xff]  ;;  %v93_v3 = vadd.f32 %v53_v1, %v52_v0  ;;  %v37_v4 = vld [vmem:[#allocation4 + $0x8] sm:$0xff]  ;;  %v54_v5 = vld [vmem:[#allocation4 + $0x90] sm:$0xff]  ;;  %v258_v15 = vmax.f32 %v52_v0, %v53_v1  ;;  %v676_v0 = vmov 0.0   ;;  %v677_v1 = vmov -inf   ;;  %s679_s8 = smov [#allocation7]  }
  0x10   :  { %v55_v6 = vld [vmem:[#allocation4 + $0x98] sm:$0xff]  ;;  %v69_v7 = vadd.f32 %v37_v4, %v36_v2  ;;  %v38_v8 = vld [vmem:[#allocation4 + $0x10] sm:$0xff]  ;;  %v234_v13 = vmax.f32 %v36_v2, %v37_v4  ;;  %v56_v16 = vld [vmem:[#allocation4 + $0xa0] sm:$0xff]  ;;  %34 = vst.msk [vmem:[#allocation2] sm:$0x3] %vm33_vm0, %v676_v0  ;;  %594 = vmatprep.subr.mxu0 %v676_v0  ;;  %613 = vmatprep.subr.mxu1 %v676_v0  ;;  %vm144_vm2 = vcmask 130112  }
  0x11   :  { %v39_v9 = vld [vmem:[#allocation4 + $0x18] sm:$0xff]  ;;  %94 = vadd.xlane.f32.xlu1 %v93_v3  ;;  %v96_v10 = vadd.f32 %v55_v6, %v54_v5  ;;  %v261_v14 = vmax.f32 %v54_v5, %v55_v6  ;;  %v57_v17 = vld [vmem:[#allocation4 + $0xa8] sm:$0xff]  ;;  %v40_v18 = vld [vmem:[#allocation4 + $0x20] sm:$0xff]  ;;  %35 = vst.msk [vmem:[#allocation3] sm:$0x3] %vm33_vm0, %v677_v1  ;;  %610 = vmatprep.mubr.msk.f32.mxu0 %vm678_vm1, %v676_v0  ;;  %vm151_vm3 = vcmask 195712  }
  0x12   :  { %70 = vadd.xlane.f32.xlu0 %v69_v7  ;;  %v72_v11 = vadd.f32 %v39_v9, %v38_v8  ;;  %v237_v12 = vmax.f32 %v38_v8, %v39_v9  ;;  %v41_v19 = vld [vmem:[#allocation4 + $0x28] sm:$0xff]  ;;  %v99_v20 = vadd.f32 %v57_v17, %v56_v16  ;;  %v264_v22 = vmax.f32 %v56_v16, %v57_v17  ;;  %v58_v24 = vld [vmem:[#allocation4 + $0xb0] sm:$0xff]  ;;  %v59_v25 = vld [vmem:[#allocation4 + $0xb8] sm:$0xff]  ;;  %s570_s9 = sshll.u32 %s679_s8, 4  ;;  %s571_s9 = int_to_ptr.vmem [resolvable:$true] %s570_s9 }
  0x13   :  { %v75_v21 = vadd.f32 %v41_v19, %v40_v18  ;;  %v240_v23 = vmax.f32 %v40_v18, %v41_v19  ;;  %v42_v26 = vld [vmem:[#allocation4 + $0x30] sm:$0xff]  ;;  %v43_v27 = vld [vmem:[#allocation4 + $0x38] sm:$0xff]  ;;  %v102_v28 = vadd.f32 %v59_v25, %v58_v24  ;;  %v267_v30 = vmax.f32 %v58_v24, %v59_v25  ;;  %v60_v32 = vld [vmem:[#allocation4 + $0xc0] sm:$0xff]  ;;  %615 = vmatprep.mubr.msk.f32.mxu1 %vm678_vm1, %v676_v0  ;;  %p654_p6 = scmp.lt.s32.totalorder %s571_s9, %s571_s9 }
  0x14   :  { %v78_v29 = vadd.f32 %v43_v27, %v42_v26  ;;  %v243_v31 = vmax.f32 %v42_v26, %v43_v27  ;;  %v61_v33 = vld [vmem:[#allocation4 + $0xc8] sm:$0xff]  ;;  %v44_v34 = vld [vmem:[#allocation4 + $0x40] sm:$0xff]  ;;  %v62_v40 = vld [vmem:[#allocation4 + $0xd0] sm:$0xff]  ;;  %v133_v27 = vlaneseq  ;;  %vm158_vm4 = vcmask 261312  }
  0x15   :  { %97 = vadd.xlane.f32.xlu1 %v96_v10  ;;  %v45_v35 = vld [vmem:[#allocation4 + $0x48] sm:$0xff]  ;;  %v105_v36 = vadd.f32 %v61_v33, %v60_v32  ;;  %v270_v38 = vmax.f32 %v60_v32, %v61_v33  ;;  %v63_v41 = vld [vmem:[#allocation4 + $0xd8] sm:$0xff]  ;;  %v46_v42 = vld [vmem:[#allocation4 + $0x50] sm:$0xff]  ;;  %vm165_vm5 = vcmask 326912   ;;  %vm172_vm6 = vcmask 392512  }
  0x16   :  { %73 = vadd.xlane.f32.xlu0 %v72_v11  ;;  %v81_v37 = vadd.f32 %v45_v35, %v44_v34  ;;  %v246_v39 = vmax.f32 %v44_v34, %v45_v35  ;;  %v47_v43 = vld [vmem:[#allocation4 + $0x58] sm:$0xff]  ;;  %v108_v44 = vadd.f32 %v63_v41, %v62_v40  ;;  %v273_v46 = vmax.f32 %v62_v40, %v63_v41  ;;  %v64_v48 = vld [vmem:[#allocation4 + $0xe0] sm:$0xff]  ;;  %v65_v49 = vld [vmem:[#allocation4 + $0xe8] sm:$0xff] }
  0x17   :  { %v84_v45 = vadd.f32 %v47_v43, %v46_v42  ;;  %v249_v47 = vmax.f32 %v46_v42, %v47_v43  ;;  %v48_v50 = vld [vmem:[#allocation4 + $0x60] sm:$0xff]  ;;  %v49_v51 = vld [vmem:[#allocation4 + $0x68] sm:$0xff]  ;;  %v111_v52 = vadd.f32 %v65_v49, %v64_v48  ;;  %v276_v54 = vmax.f32 %v64_v48, %v65_v49  ;;  %v66_v56 = vld [vmem:[#allocation4 + $0xf0] sm:$0xff] }
  0x18   :  { %v87_v53 = vadd.f32 %v49_v51, %v48_v50  ;;  %v252_v55 = vmax.f32 %v48_v50, %v49_v51  ;;  %v67_v57 = vld [vmem:[#allocation4 + $0xf8] sm:$0xff]  ;;  %v50_v58 = vld [vmem:[#allocation4 + $0x70] sm:$0xff]  ;;  %v396_v4 = vld [vmem:[%s871_s1 + $0x28] sm:$0xff]  ;;  %v136_v33 = vshrl.u32 %v133_v27, 7  ;;  %vm179_vm7 = vcmask 458112  }
  0x19   :  { %238 = vmax.xlane.f32.xlu1 %v237_v12  ;;  %v51_v59 = vld [vmem:[#allocation4 + $0x78] sm:$0xff]  ;;  %v114_v60 = vadd.f32 %v67_v57, %v66_v56  ;;  %v279_v62 = vmax.f32 %v66_v56, %v67_v57  ;;  %v397_v3 = vld [vmem:[%s871_s1 + $0x30] sm:$0xff]  ;;  %v392_v8 = vld [vmem:[%s871_s1 + $0x8] sm:$0xff]  ;;  %vm186_vm8 = vcmask 523712   ;;  %vm227_vm9 = vcmask 1041409  }
  0x1a   :  { %235 = vmax.xlane.f32.xlu0 %v234_v13  ;;  %v90_v61 = vadd.f32 %v51_v59, %v50_v58  ;;  %v255_v63 = vmax.f32 %v50_v58, %v51_v59  ;;  %v398_v2 = vld [vmem:[%s871_s1 + $0x38] sm:$0xff]  ;;  %v395_v5 = vld [vmem:[%s871_s1 + $0x20] sm:$0xff]  ;;  %v393_v7 = vld [vmem:[%s871_s1 + $0x10] sm:$0xff]  ;;  %vm389_vm10 = vcmask 1041408   ;;  %vm400_vm11 = vcmask 523264  }
  0x1b   :  { %595 = vmatpush3.msra.mxu0 %v398_v2  ;;  %v394_v6 = vld [vmem:[%s871_s1 + $0x18] sm:$0xff]  ;;  %v391_v9 = vld [vmem:[%s871_s1] sm:$0xff]  ;;  %vm479_vm12 = vcmask 1043456   ;;  %vm475_vm13 = vcmask 31744  }
  0x1c   :  { %596 = vmatprep.subr.mxu0 %v676_v0 }
  0x1d   :  { %262 = vmax.xlane.f32.xlu1 %v261_v14  ;;  %597 = vmatpush3.msra.mxu0 %v397_v3 }
  0x1e   :  { %259 = vmax.xlane.f32.xlu0 %v258_v15  ;;  %598 = vmatprep.subr.mxu0 %v676_v0 }
  0x1f   :  { %599 = vmatpush3.msra.mxu0 %v396_v4 }
  0x20   :  { %600 = vmatprep.subr.mxu0 %v676_v0 }
  0x21   :  { %100 = vadd.xlane.f32.xlu1 %v99_v20  ;;  %601 = vmatpush3.msra.mxu0 %v395_v5 }
  0x22   :  { %76 = vadd.xlane.f32.xlu0 %v75_v21  ;;  %602 = vmatprep.subr.mxu0 %v676_v0 }
  0x23   :  { %603 = vmatpush3.msra.mxu0 %v394_v6 }
  0x24   :  { %604 = vmatprep.subr.mxu0 %v676_v0 }
  0x25   :  { %265 = vmax.xlane.f32.xlu1 %v264_v22  ;;  %605 = vmatpush3.msra.mxu0 %v393_v7 }
  0x26   :  { %241 = vmax.xlane.f32.xlu0 %v240_v23  ;;  %606 = vmatprep.subr.mxu0 %v676_v0 }
  0x27   :  { %607 = vmatpush3.msra.mxu0 %v392_v8 }
  0x28   :  { %608 = vmatprep.subr.mxu0 %v676_v0 }
  0x29   :  { %103 = vadd.xlane.f32.xlu1 %v102_v28  ;;  %609 = vmatpush3.msra.mxu0 %v391_v9 }
  0x2a   :  { %79 = vadd.xlane.f32.xlu0 %v78_v29 }
  0x2d   :  { %268 = vmax.xlane.f32.xlu1 %v267_v30  ;;  %v134_v30 = vand.u32 127, %v133_v27 }
  0x2e   :  { %244 = vmax.xlane.f32.xlu0 %v243_v31 }
  0x2f   :  { %v139_v32 = vadd.s32 4294967288, %v134_v30  ;;  %v146_v34 = vadd.s32 4294967280, %v134_v30  ;;  %v174_v40 = vadd.s32 4294967248, %v134_v30  ;;  %v181_v42 = vadd.s32 4294967240, %v134_v30 }
  0x30   :  { %v137_v43 = vsub.s32 %v134_v30, %v136_v33 }
  0x31   :  { %106 = vadd.xlane.f32.xlu1 %v105_v36  ;;  %v153_v36 = vadd.s32 4294967272, %v134_v30  ;;  %v142_v41 = vsub.s32 %v139_v32, %v136_v33  ;;  %v783_v50 = vsub.s32 %v174_v40, %v136_v33 }
  0x32   :  { %82 = vadd.xlane.f32.xlu0 %v81_v37  ;;  %v160_v37 = vadd.s32 4294967264, %v134_v30 }
  0x35   :  { %271 = vmax.xlane.f32.xlu1 %v270_v38 }
  0x36   :  { %247 = vmax.xlane.f32.xlu0 %v246_v39  ;;  %v167_v39 = vadd.s32 4294967256, %v134_v30 }
  0x38   :  { %v781_v49 = vsub.s32 %v167_v39, %v136_v33 }
  0x39   :  { %109 = vadd.xlane.f32.xlu1 %v108_v44  ;;  %v149_v44 = vsub.s32 %v146_v34, %v136_v33 }
  0x3a   :  { %85 = vadd.xlane.f32.xlu0 %v84_v45 }
  0x3d   :  { %274 = vmax.xlane.f32.xlu1 %v273_v46  ;;  %v775_v46 = vsub.s32 %v153_v36, %v136_v33 }
  0x3e   :  { %250 = vmax.xlane.f32.xlu0 %v249_v47  ;;  %v777_v47 = vsub.s32 %v160_v37, %v136_v33 }
  0x41   :  { %112 = vadd.xlane.f32.xlu1 %v111_v52 }
  0x42   :  { %88 = vadd.xlane.f32.xlu0 %v87_v53  ;;  %v787_v53 = vsub.s32 %v181_v42, %v136_v33  ;;  %v68_v42 = vld [vmem:[#allocation2] sm:$0x3] }
  0x45   :  { %277 = vmax.xlane.f32.xlu1 %v276_v54 }
  0x46   :  { %253 = vmax.xlane.f32.xlu0 %v252_v55 }
  0x49   :  { %115 = vadd.xlane.f32.xlu1 %v114_v60 }
  0x4a   :  { %91 = vadd.xlane.f32.xlu0 %v90_v61 }
  0x4d   :  { %280 = vmax.xlane.f32.xlu1 %v279_v62 }
  0x4e   :  { %256 = vmax.xlane.f32.xlu0 %v255_v63 }
  0x9a   :  { %v729_v10 = vpop.xlane.xlu1 %94 }
  0x9b   :  { %v731_v11 = vpop.xlane.xlu0 %70  ;;  %v191_v59 = vrot.slane %v729_v10, %v137_v43 }
  0x9c   :  { %v138_v60 = vrot.slane %v731_v11, %v137_v43 }
  0x9e   :  { %v733_v12 = vpop.xlane.xlu1 %97 }
  0x9f   :  { %v735_v13 = vpop.xlane.xlu0 %73  ;;  %v195_v51 = vrot.slane %v733_v12, %v142_v41 }
  0xa0   :  { %v143_v52 = vrot.slane %v735_v13, %v142_v41 }
  0xa1   :  { %v196_v3 = vsel %vm144_vm2, %v195_v51, %v191_v59  ;;  %v233_v59 = vld [vmem:[#allocation3] sm:$0x3] }
  0xa2   :  { %v737_v14 = vpop.xlane.xlu1 %238  ;;  %v145_v4 = vsel %vm144_vm2, %v143_v52, %v138_v60 }
  0xa3   :  { %v739_v15 = vpop.xlane.xlu0 %235  ;;  %v305_v54 = vrot.slane %v737_v14, %v142_v41 }
  0xa4   :  { %v301_v55 = vrot.slane %v739_v15, %v137_v43 }
  0xa6   :  { %v741_v16 = vpop.xlane.xlu1 %262  ;;  %v306_v6 = vsel %vm144_vm2, %v305_v54, %v301_v55 }
  0xa7   :  { %v743_v17 = vpop.xlane.xlu0 %259  ;;  %v344_v56 = vrot.slane %v741_v16, %v142_v41 }
  0xa8   :  { %v340_v57 = vrot.slane %v743_v17, %v137_v43 }
  0xaa   :  { %v745_v18 = vpop.xlane.xlu1 %100  ;;  %v345_v7 = vsel %vm144_vm2, %v344_v56, %v340_v57 }
  0xab   :  { %v747_v19 = vpop.xlane.xlu0 %76  ;;  %v200_v61 = vrot.slane %v745_v18, %v149_v44 }
  0xac   :  { %v150_v62 = vrot.slane %v747_v19, %v149_v44 }
  0xad   :  { %v201_v11 = vsel %vm151_vm3, %v200_v61, %v196_v3  ;;  %v399_v3 = vld [vmem:[%s872_s2] sm:$0xf]  ;;  %s649_s2 = scalar_lea.vmem %s571_s9, 32 }
  0xae   :  { %v749_v20 = vpop.xlane.xlu1 %265  ;;  %v152_v12 = vsel %vm151_vm3, %v150_v62, %v145_v4  ;;  %614 = vmatpush3.msk.msra.mxu1 %vm479_vm12, %v399_v3  ;;  %p650_p5 = scmp.ne.s32.totalorder %s571_s9, %s649_s2  ;;  %p655_p7 = scmp.lt.s32.totalorder %s649_s2, %s649_s2 }
  0xaf   :  { %v751_v21 = vpop.xlane.xlu0 %241  ;;  %v349_v0 = vrot.slane %v749_v20, %v149_v44 }
  0xb0   :  { %v310_v1 = vrot.slane %v751_v21, %v149_v44  ;;  %p656_p8 = por %p655_p7, %p654_p6 }
  0xb1   :  { %v350_v16 = vsel %vm151_vm3, %v349_v0, %v345_v7 }
  0xb2   :  { %v753_v22 = vpop.xlane.xlu1 %103  ;;  %v311_v17 = vsel %vm151_vm3, %v310_v1, %v306_v6  ;;  %p657_p9 = pnand %p656_p8, %p650_p5 }
  0xb3   :  { %v755_v23 = vpop.xlane.xlu0 %79  ;;  %v205_v2 = vrot.slane %v753_v22, %v775_v46 }
  0xb4   :  { %v157_v5 = vrot.slane %v755_v23, %v775_v46 }
  0xb5   :  { %v206_v18 = vsel %vm158_vm4, %v205_v2, %v201_v11 }
  0xb6   :  { %v757_v24 = vpop.xlane.xlu1 %268  ;;  %v159_v20 = vsel %vm158_vm4, %v157_v5, %v152_v12 }
  0xb7   :  { %v759_v25 = vpop.xlane.xlu0 %244  ;;  %v354_v21 = vrot.slane %v757_v24, %v775_v46 }
  0xb8   :  { %v315_v22 = vrot.slane %v759_v25, %v775_v46 }
  0xba   :  { %v761_v26 = vpop.xlane.xlu1 %106  ;;  %v316_v43 = vsel %vm158_vm4, %v315_v22, %v311_v17 }
  0xbb   :  { %v763_v28 = vpop.xlane.xlu0 %82  ;;  %v210_v8 = vrot.slane %v761_v26, %v777_v47 }
  0xbc   :  { %v164_v9 = vrot.slane %v763_v28, %v777_v47 }
  0xbd   :  { %v211_v26 = vsel %vm165_vm5, %v210_v8, %v206_v18 }
  0xbe   :  { %v765_v29 = vpop.xlane.xlu1 %271  ;;  %v166_v27 = vsel %vm165_vm5, %v164_v9, %v159_v20 }
  0xbf   :  { %v767_v31 = vpop.xlane.xlu0 %247  ;;  %v359_v28 = vrot.slane %v765_v29, %v777_v47 }
  0xc0   :  { %v320_v30 = vrot.slane %v767_v31, %v777_v47 }
  0xc2   :  { %v769_v35 = vpop.xlane.xlu1 %109  ;;  %v321_v47 = vsel %vm165_vm5, %v320_v30, %v316_v43 }
  0xc3   :  { %v771_v38 = vpop.xlane.xlu0 %85  ;;  %v215_v13 = vrot.slane %v769_v35, %v781_v49 }
  0xc4   :  { %v171_v14 = vrot.slane %v771_v38, %v781_v49  ;;  %v355_v38 = vsel %vm158_vm4, %v354_v21, %v350_v16 }
  0xc5   :  { %v216_v33 = vsel %vm172_vm6, %v215_v13, %v211_v26  ;;  %v360_v44 = vsel %vm165_vm5, %v359_v28, %v355_v38 }
  0xc6   :  { %v773_v45 = vpop.xlane.xlu1 %274  ;;  %v173_v24 = vsel %vm172_vm6, %v171_v14, %v166_v27 }
  0xc7   :  { %v779_v48 = vpop.xlane.xlu0 %250  ;;  %v364_v25 = vrot.slane %v773_v45, %v781_v49 }
  0xc8   :  { %v325_v36 = vrot.slane %v779_v48, %v781_v49 }
  0xc9   :  { %v365_v48 = vsel %vm172_vm6, %v364_v25, %v360_v44 }
  0xca   :  { %v113_v58 = vpop.xlane.xlu1 %112 }
  0xcb   :  { %v89_v63 = vpop.xlane.xlu0 %88  ;;  %v220_v19 = vrot.slane %v113_v58, %v783_v50 }
  0xcc   :  { %v178_v23 = vrot.slane %v89_v63, %v783_v50 }
  0xcd   :  { %v221_v37 = vsel %vm179_vm7, %v220_v19, %v216_v33 }
  0xce   :  { %v278_v10 = vpop.xlane.xlu1 %277  ;;  %v180_v39 = vsel %vm179_vm7, %v178_v23, %v173_v24 }
  0xcf   :  { %v254_v15 = vpop.xlane.xlu0 %253  ;;  %v369_v29 = vrot.slane %v278_v10, %v783_v50 }
  0xd0   :  { %v330_v40 = vrot.slane %v254_v15, %v783_v50  ;;  %v326_v50 = vsel %vm172_vm6, %v325_v36, %v321_v47 }
  0xd1   :  { %v370_v54 = vsel %vm179_vm7, %v369_v29, %v365_v48 }
  0xd2   :  { %v116_v32 = vpop.xlane.xlu1 %115  ;;  %v331_v57 = vsel %vm179_vm7, %v330_v40, %v326_v50 }
  0xd3   :  { %v225_v34 = vrot.slane %v116_v32, %v787_v53  ;;  %v92_v35 = vpop.xlane.xlu0 %91 }
  0xd4   :  { %v185_v31 = vrot.slane %v92_v35, %v787_v53 }
  0xd5   :  { %v226_v41 = vsel %vm186_vm8, %v225_v34, %v221_v37 }
  0xd6   :  { %v187_v45 = vsel %vm186_vm8, %v185_v31, %v180_v39  ;;  %v281_v46 = vpop.xlane.xlu1 %280 }
  0xd7   :  { %v228_v49 = vsel %vm227_vm9, %v226_v41, %v187_v45  ;;  %v374_v51 = vrot.slane %v281_v46, %v787_v53  ;;  %v257_v52 = vpop.xlane.xlu0 %256 }
  0xd8   :  { %v230_v55 = vadd.f32 %v228_v49, %v68_v42  ;;  %v335_v56 = vrot.slane %v257_v52, %v787_v53 }
  0xd9   :  { %v375_v58 = vsel %vm186_vm8, %v374_v51, %v370_v54 }
  0xda   :  { %232 = vst.msk [vmem:[#allocation2] sm:$0x3] %vm33_vm0, %v230_v55  ;;  %v336_v60 = vsel %vm186_vm8, %v335_v56, %v331_v57 }
  0xdb   :  { %v376_v61 = vsel %vm227_vm9, %v375_v58, %v336_v60 }
  0xdc   :  { %v378_v62 = vmax.f32 %v233_v59, %v376_v61 }
  0xde   :  { %379 = vst.msk [vmem:[#allocation3] sm:$0x3] %vm33_vm0, %v378_v62 }
  0xe1   :  { %v383_v63 = vld [vmem:[#allocation2] sm:$0x3] }
  0xe2   :  { %v384_v1 = vmul.f32 0.00390625, %v383_v63 }
  0xe5   :  { %v385_v0 = vld [vmem:[#allocation3] sm:$0x3] }
  0xe6   :  { %v387_v2 = vrot.slane %v385_v0, 6 }
  0xe8   :  { %v390_v53 = vsel %vm389_vm10, %v384_v1, %v387_v2 }
  0xe9   :  { %611 = vmatmul.mubr.msk.f32.vlgmr.msra.gmra.mxu0 %vm400_vm11, %v390_v53 }
 0x1a9   :  { %v470_v4 = vpop.f32.mrf.mxu0 }
 0x1aa   :  { %v474_v5 = vmax.f32 %v470_v4, 0.0 }
 0x1ab   :  { %v612_v6 = vpop.f32.mrf.mxu0 }
 0x1ac   :  { %616 = vmatmul.mubr.msk.f32.vlgmr.msra.gmra.mxu1 %vm475_vm13, %v474_v5 }
 0x26c   :  { %v549_v7 = vpop.f32.mrf.mxu1 }
 0x26d   :  { %v554_v8 = vrot.slane %v549_v7, 2 }
 0x26e   :  { %v617_v9 = vpop.f32.mrf.mxu1 }
 0x26f   :  { %v556_v10 = vadd.f32 %v554_v8, %v549_v7 }
 0x271   :  { %v582_v11 = vmul.f32 -1.442695, %v556_v10 }
 0x273   :  { %625 = vpow2.f32 %v582_v11 }
 0x280   :  { %v626_v12 = vpop.eup %625 }
 0x281   :  { %v560_v13 = vadd.f32 1.0, %v626_v12 }
 0x283   :  { %627 = vrcp.f32 %v560_v13 }
 0x290   :  { %v628_v14 = vpop.eup %627 }
 0x291   :  { %563 = vst.msk [vmem:[#allocation7] sm:$0x3] %vm33_vm0, %v628_v14 }
 0x292   :  { %660 = shalt.err (!%p657_p9)
}
 0x293   :  { %573 = dma.vmem_to_hbm [thread:$0]  %s571_s9, 32, %s873_s3, [#allocation6]  }
 0x294   :  { %671 = dma.done.wait [#allocation6], 32  }
 0x295   :  { %672 = vsyncadd [#allocation6], 4294967264 }
 0x296   :  { %577 = vsyncpa [#allocation5], 1 }
 0x297   :  { %578 = vsyncpa [#allocation6], 1 }

</bundles_post_ra>
